<compile_context>
chip_gen: v7x
topology: tpu7x:2x2x1
jax: 0.10.0
libtpu: 0.0.40
codegen_flags: <defaults>
</compile_context>

<pallas_src>
import functools

import jax
import jax.numpy as jnp
import numpy as np
from jax.experimental import pallas as pl
from jax.experimental.pallas import tpu as pltpu

TEMPERATURE = 0.1
LANE = 128
SUBLANE = 8
# Padding value for ragged N: exp(PAD/T - m) underflows to 0 for any sane T,
# stays finite (so 0 * PAD == 0 in the masked-label dot), fits bf16/fp16.
PAD_SCORE = -30000.0
DEFAULT_TILE_ROWS = 2048   # 2048 x 128 f32 = 1 MiB per input per pipeline buffer


def _sum11(x):
    # (R, 128) -> (1, 1), explicit per-axis reductions (lane then sublane).
    return jnp.sum(jnp.sum(x, axis=1, keepdims=True), axis=0, keepdims=True)


def _max11(x):
    return jnp.max(jnp.max(x, axis=1, keepdims=True), axis=0, keepdims=True)


def _contrastive_loss_kernel(scores_ref, labels_ref, numer_ref, labsum_ref,
                             m_ref, se_ref, dot_ref, ls_ref, *, inv_temp):
    # scores_ref/labels_ref: (tile_rows, 128) tiles of one batch row (input dtype).
    # numer_ref/labsum_ref : (8, 128) per-batch output tiles (written at last step).
    # m/se/dot/ls          : (1, 1) f32 VMEM accumulators (running max, rescaled
    #                        sum-exp, sum(mask*lab*s/T), sum(mask*lab)).
    n = pl.program_id(1)

    @pl.when(n == 0)
    def _init():
        m_ref[...] = jnp.full(m_ref.shape, -jnp.inf, jnp.float32)
        se_ref[...] = jnp.zeros(se_ref.shape, jnp.float32)
        dot_ref[...] = jnp.zeros(dot_ref.shape, jnp.float32)
        ls_ref[...] = jnp.zeros(ls_ref.shape, jnp.float32)

    x = scores_ref[...].astype(jnp.float32) * inv_temp          # s / T
    lab = labels_ref[...].astype(jnp.float32)
    lab_m = jnp.where(lab >= 0.01, lab, 0.0)                     # single select, reused

    # Online log-sum-exp accumulation (numerically stable denominator).
    m_old = m_ref[...]                                           # (1, 1)
    m_new = jnp.maximum(m_old, _max11(x))
    corr = jnp.exp(m_old - m_new)
    se_ref[...] = se_ref[...] * corr + _sum11(jnp.exp(x - m_new))
    # Masked-label terms (the only other per-element work).
    dot_ref[...] = dot_ref[...] + _sum11(lab_m * x)
    ls_ref[...] = ls_ref[...] + _sum11(lab_m)
    m_ref[...] = m_new

    @pl.when(n == pl.num_programs(1) - 1)
    def _finalize():
        log_denom = m_ref[...] + jnp.log(se_ref[...])            # (1, 1)
        numer = dot_ref[...] - ls_ref[...] * log_denom           # (1, 1)
        numer_ref[...] = jnp.broadcast_to(numer, numer_ref.shape)
        labsum_ref[...] = jnp.broadcast_to(ls_ref[...], labsum_ref.shape)


def contrastive_loss(scores, labels, temperature=TEMPERATURE,
                     tile_rows=DEFAULT_TILE_ROWS):
    """scores, labels: [B, C, H, W] (any float dtype). Returns scalar f32 loss."""
    B = scores.shape[0]
    N = int(np.prod(scores.shape[1:]))

    s2 = scores.reshape(B, N)            # keep caller dtype; cast happens in-kernel
    l2 = labels.reshape(B, N)

    # Lay each batch row out as (rows, 128) so vregs are fully occupied even
    # for tiny B; pad rows to a multiple of the tile height.
    rows = (N + LANE - 1) // LANE
    rows8 = ((rows + SUBLANE - 1) // SUBLANE) * SUBLANE
    tile_r = min(tile_rows, rows8)                      # multiple of 8 either way
    padded_rows = ((rows8 + tile_r - 1) // tile_r) * tile_r
    padded_n = padded_rows * LANE
    if padded_n != N:
        pad = padded_n - N
        s2 = jnp.pad(s2, ((0, 0), (0, pad)), constant_values=PAD_SCORE)
        l2 = jnp.pad(l2, ((0, 0), (0, pad)), constant_values=0.0)
    s3 = s2.reshape(B, padded_rows, LANE)
    l3 = l2.reshape(B, padded_rows, LANE)
    num_tiles = padded_rows // tile_r

    bytes_in = int(s3.size) * s3.dtype.itemsize + int(l3.size) * l3.dtype.itemsize
    cost = pl.CostEstimate(
        flops=8 * B * padded_n,              # mul/cmp/select/mul/adds per element
        transcendentals=B * padded_n,        # one exp per element
        bytes_accessed=bytes_in + 2 * B * SUBLANE * LANE * 4,
    )

    numer_out, labsum_out = pl.pallas_call(
        functools.partial(_contrastive_loss_kernel,
                          inv_temp=float(1.0 / temperature)),
        out_shape=(jax.ShapeDtypeStruct((B, SUBLANE, LANE), jnp.float32),
                   jax.ShapeDtypeStruct((B, SUBLANE, LANE), jnp.float32)),
        grid_spec=pltpu.PrefetchScalarGridSpec(
            num_scalar_prefetch=0,
            grid=(B, num_tiles),
            in_specs=[
                pl.BlockSpec((None, tile_r, LANE), lambda b, n: (b, n, 0)),
                pl.BlockSpec((None, tile_r, LANE), lambda b, n: (b, n, 0)),
            ],
            out_specs=(
                pl.BlockSpec((None, SUBLANE, LANE), lambda b, n: (b, 0, 0)),
                pl.BlockSpec((None, SUBLANE, LANE), lambda b, n: (b, 0, 0)),
            ),
            scratch_shapes=[pltpu.VMEM((1, 1), jnp.float32)] * 4,
        ),
        compiler_params=pltpu.CompilerParams(
            dimension_semantics=("parallel", "arbitrary")),
        cost_estimate=cost,
    )(s3, l3)

    numer = numer_out[:, 0, 0]          # (B,)
    labsum = labsum_out[:, 0, 0]        # (B,)
    # Tiny final combine over B elements (matches reference: NaN if no label
    # passes the 0.01 threshold).
    return -jnp.sum(numer) / jnp.sum(labsum)


def _reference_loss(scores, labels, temperature=TEMPERATURE):
    # Pure-JAX reference mirroring the PyTorch forward (exp-then-log form).
    scores = scores.astype(jnp.float32)
    labels = labels.astype(jnp.float32)
    e = jnp.exp(scores / temperature)
    denom = jnp.sum(e, axis=(1, 2, 3), keepdims=True)
    mask = labels >= 0.01
    inner = jnp.where(mask, jnp.log(e / denom), 0.0)
    lab = jnp.where(mask, labels, 0.0)
    return -jnp.sum(inner * lab) / jnp.sum(lab)


if __name__ == "__main__":
    key = jax.random.PRNGKey(0)
    k_s, k_l, k_m = jax.random.split(key, 3)

    # Shapes implied by the module's [B, C, H, W] inputs.
    B, C, H, W = 2, 4, 16, 16
    scores = jax.random.normal(k_s, (B, C, H, W), dtype=jnp.float32)
    # Sparse non-negative labels: ~30% of positions carry positive weight.
    raw = jax.random.uniform(k_l, (B, C, H, W), dtype=jnp.float32)
    keep = jax.random.uniform(k_m, (B, C, H, W)) > 0.7
    labels = jnp.where(keep, raw, 0.0)

    loss = jax.block_until_ready(contrastive_loss(scores, labels))
    ref = _reference_loss(scores, labels)
    np.testing.assert_allclose(np.asarray(loss), np.asarray(ref),
                               rtol=1e-4, atol=1e-5)

    # Second check: ragged spatial size (exercises lane padding path).
    k2s, k2l, k2m = jax.random.split(jax.random.PRNGKey(1), 3)
    scores2 = jax.random.normal(k2s, (2, 3, 10, 10), dtype=jnp.float32)
    raw2 = jax.random.uniform(k2l, (2, 3, 10, 10), dtype=jnp.float32)
    keep2 = jax.random.uniform(k2m, (2, 3, 10, 10)) > 0.7
    labels2 = jnp.where(keep2, raw2, 0.0)
    loss2 = jax.block_until_ready(contrastive_loss(scores2, labels2))
    ref2 = _reference_loss(scores2, labels2)
    np.testing.assert_allclose(np.asarray(loss2), np.asarray(ref2),
                               rtol=1e-4, atol=1e-5)

    print("KERNEL_OK")
</pallas_src>

<mosaic_0001>
module attributes {stable_mosaic.version = 11 : i64} {
  func.func @_contrastive_loss_kernel(%arg0: i32, %arg1: i32, %arg2: memref<1x8x128xf32, #tpu.memory_space<vmem>>, %arg3: memref<1x8x128xf32, #tpu.memory_space<vmem>>, %arg4: memref<1x8x128xf32, #tpu.memory_space<vmem>>, %arg5: memref<1x8x128xf32, #tpu.memory_space<vmem>>, %arg6: memref<1x1xf32, #tpu.memory_space<vmem>>, %arg7: memref<1x1xf32, #tpu.memory_space<vmem>>, %arg8: memref<1x1xf32, #tpu.memory_space<vmem>>, %arg9: memref<1x1xf32, #tpu.memory_space<vmem>>) attributes {dimension_semantics = [#tpu.dimension_semantics<parallel>, #tpu.dimension_semantics<arbitrary>], iteration_bounds = array<i64: 2, 1>, scalar_prefetch = 0 : i64, scratch_operands = 4 : i64, tpu.core_type = #tpu.core_type<tc>, window_params = [{transform_indices = @transform_0, window_bounds = array<i64: 1, 8, 128>}, {transform_indices = @transform_1, window_bounds = array<i64: 1, 8, 128>}, {transform_indices = @transform_2, window_bounds = array<i64: 1, 8, 128>}, {transform_indices = @transform_3, window_bounds = array<i64: 1, 8, 128>}]} {
    %c0_i32 = arith.constant 0 : i32
    %0 = arith.cmpi eq, %arg1, %c0_i32 : i32
    %1 = arith.extui %0 : i1 to i32
    %c0_i32_0 = arith.constant 0 : i32
    %2 = arith.cmpi ne, %1, %c0_i32_0 : i32
    scf.if %2 {
      %cst_34 = arith.constant 0xFF800000 : f32
      %51 = vector.broadcast %cst_34 : f32 to vector<1x1xf32>
      %c0_35 = arith.constant 0 : index
      %c0_36 = arith.constant 0 : index
      %52 = vector.load %arg6[%c0_35, %c0_36] : memref<1x1xf32, #tpu.memory_space<vmem>>, vector<1x1xf32>
      tpu.vector_store %arg6[%c0_35, %c0_36], %51 {strides = array<i32>} : memref<1x1xf32, #tpu.memory_space<vmem>>, vector<1x1xf32>,
      %cst_37 = arith.constant 0.000000e+00 : f32
      %53 = vector.broadcast %cst_37 : f32 to vector<1x1xf32>
      %c0_38 = arith.constant 0 : index
      %c0_39 = arith.constant 0 : index
      %54 = vector.load %arg7[%c0_38, %c0_39] : memref<1x1xf32, #tpu.memory_space<vmem>>, vector<1x1xf32>
      tpu.vector_store %arg7[%c0_38, %c0_39], %53 {strides = array<i32>} : memref<1x1xf32, #tpu.memory_space<vmem>>, vector<1x1xf32>,
      %cst_40 = arith.constant 0.000000e+00 : f32
      %55 = vector.broadcast %cst_40 : f32 to vector<1x1xf32>
      %c0_41 = arith.constant 0 : index
      %c0_42 = arith.constant 0 : index
      %56 = vector.load %arg8[%c0_41, %c0_42] : memref<1x1xf32, #tpu.memory_space<vmem>>, vector<1x1xf32>
      tpu.vector_store %arg8[%c0_41, %c0_42], %55 {strides = array<i32>} : memref<1x1xf32, #tpu.memory_space<vmem>>, vector<1x1xf32>,
      %cst_43 = arith.constant 0.000000e+00 : f32
      %57 = vector.broadcast %cst_43 : f32 to vector<1x1xf32>
      %c0_44 = arith.constant 0 : index
      %c0_45 = arith.constant 0 : index
      %58 = vector.load %arg9[%c0_44, %c0_45] : memref<1x1xf32, #tpu.memory_space<vmem>>, vector<1x1xf32>
      tpu.vector_store %arg9[%c0_44, %c0_45], %57 {strides = array<i32>} : memref<1x1xf32, #tpu.memory_space<vmem>>, vector<1x1xf32>,
    } else {
    }
    %c0 = arith.constant 0 : index
    %c0_1 = arith.constant 0 : index
    %c0_2 = arith.constant 0 : index
    %3 = vector.load %arg2[%c0, %c0_1, %c0_2] : memref<1x8x128xf32, #tpu.memory_space<vmem>>, vector<1x8x128xf32>
    %4 = vector.shape_cast %3 : vector<1x8x128xf32> to vector<8x128xf32>
    %cst = arith.constant 1.000000e+01 : f32
    %5 = vector.broadcast %cst : f32 to vector<8x128xf32>
    %6 = arith.mulf %4, %5 : vector<8x128xf32>
    %c0_3 = arith.constant 0 : index
    %c0_4 = arith.constant 0 : index
    %c0_5 = arith.constant 0 : index
    %7 = vector.load %arg3[%c0_3, %c0_4, %c0_5] : memref<1x8x128xf32, #tpu.memory_space<vmem>>, vector<1x8x128xf32>
    %8 = vector.shape_cast %7 : vector<1x8x128xf32> to vector<8x128xf32>
    %cst_6 = arith.constant 0.00999999977 : f32
    %9 = vector.broadcast %cst_6 : f32 to vector<8x128xf32>
    %10 = arith.cmpf oge, %8, %9 : vector<8x128xf32>
    %cst_7 = arith.constant 0.000000e+00 : f32
    %11 = vector.broadcast %cst_7 : f32 to vector<8x128xf32>
    %12 = arith.select %10, %8, %11 : vector<8x128xi1>, vector<8x128xf32>
    %c0_8 = arith.constant 0 : index
    %c0_9 = arith.constant 0 : index
    %13 = vector.load %arg6[%c0_8, %c0_9] : memref<1x1xf32, #tpu.memory_space<vmem>>, vector<1x1xf32>
    %cst_10 = arith.constant dense<0xFF800000> : vector<8xf32>
    %14 = vector.multi_reduction <maximumf>, %6, %cst_10 [1] : vector<8x128xf32> to vector<8xf32>
    %15 = vector.shape_cast %14 : vector<8xf32> to vector<8x1xf32>
    %cst_11 = arith.constant dense<0xFF800000> : vector<1xf32>
    %16 = vector.multi_reduction <maximumf>, %15, %cst_11 [0] : vector<8x1xf32> to vector<1xf32>
    %17 = vector.shape_cast %16 : vector<1xf32> to vector<1x1xf32>
    %18 = arith.maximumf %13, %17 : vector<1x1xf32>
    %19 = arith.subf %13, %18 : vector<1x1xf32>
    %20 = math.exp %19 : vector<1x1xf32>
    %c0_12 = arith.constant 0 : index
    %c0_13 = arith.constant 0 : index
    %21 = vector.load %arg7[%c0_12, %c0_13] : memref<1x1xf32, #tpu.memory_space<vmem>>, vector<1x1xf32>
    %22 = arith.mulf %21, %20 : vector<1x1xf32>
    %23 = vector.broadcast %18 : vector<1x1xf32> to vector<8x128xf32>
    %24 = arith.subf %6, %23 : vector<8x128xf32>
    %25 = math.exp %24 : vector<8x128xf32>
    %cst_14 = arith.constant dense<0.000000e+00> : vector<8xf32>
    %26 = vector.multi_reduction <add>, %25, %cst_14 [1] : vector<8x128xf32> to vector<8xf32>
    %27 = vector.shape_cast %26 : vector<8xf32> to vector<8x1xf32>
    %cst_15 = arith.constant dense<0.000000e+00> : vector<1xf32>
    %28 = vector.multi_reduction <add>, %27, %cst_15 [0] : vector<8x1xf32> to vector<1xf32>
    %29 = vector.shape_cast %28 : vector<1xf32> to vector<1x1xf32>
    %30 = arith.addf %22, %29 : vector<1x1xf32>
    %c0_16 = arith.constant 0 : index
    %c0_17 = arith.constant 0 : index
    %31 = vector.load %arg7[%c0_16, %c0_17] : memref<1x1xf32, #tpu.memory_space<vmem>>, vector<1x1xf32>
    tpu.vector_store %arg7[%c0_16, %c0_17], %30 {strides = array<i32>} : memref<1x1xf32, #tpu.memory_space<vmem>>, vector<1x1xf32>,
    %c0_18 = arith.constant 0 : index
    %c0_19 = arith.constant 0 : index
    %32 = vector.load %arg8[%c0_18, %c0_19] : memref<1x1xf32, #tpu.memory_space<vmem>>, vector<1x1xf32>
    %33 = arith.mulf %12, %6 : vector<8x128xf32>
    %cst_20 = arith.constant dense<0.000000e+00> : vector<8xf32>
    %34 = vector.multi_reduction <add>, %33, %cst_20 [1] : vector<8x128xf32> to vector<8xf32>
    %35 = vector.shape_cast %34 : vector<8xf32> to vector<8x1xf32>
    %cst_21 = arith.constant dense<0.000000e+00> : vector<1xf32>
    %36 = vector.multi_reduction <add>, %35, %cst_21 [0] : vector<8x1xf32> to vector<1xf32>
    %37 = vector.shape_cast %36 : vector<1xf32> to vector<1x1xf32>
    %38 = arith.addf %32, %37 : vector<1x1xf32>
    %c0_22 = arith.constant 0 : index
    %c0_23 = arith.constant 0 : index
    %39 = vector.load %arg8[%c0_22, %c0_23] : memref<1x1xf32, #tpu.memory_space<vmem>>, vector<1x1xf32>
    tpu.vector_store %arg8[%c0_22, %c0_23], %38 {strides = array<i32>} : memref<1x1xf32, #tpu.memory_space<vmem>>, vector<1x1xf32>,
    %c0_24 = arith.constant 0 : index
    %c0_25 = arith.constant 0 : index
    %40 = vector.load %arg9[%c0_24, %c0_25] : memref<1x1xf32, #tpu.memory_space<vmem>>, vector<1x1xf32>
    %cst_26 = arith.constant dense<0.000000e+00> : vector<8xf32>
    %41 = vector.multi_reduction <add>, %12, %cst_26 [1] : vector<8x128xf32> to vector<8xf32>
    %42 = vector.shape_cast %41 : vector<8xf32> to vector<8x1xf32>
    %cst_27 = arith.constant dense<0.000000e+00> : vector<1xf32>
    %43 = vector.multi_reduction <add>, %42, %cst_27 [0] : vector<8x1xf32> to vector<1xf32>
    %44 = vector.shape_cast %43 : vector<1xf32> to vector<1x1xf32>
    %45 = arith.addf %40, %44 : vector<1x1xf32>
    %c0_28 = arith.constant 0 : index
    %c0_29 = arith.constant 0 : index
    %46 = vector.load %arg9[%c0_28, %c0_29] : memref<1x1xf32, #tpu.memory_space<vmem>>, vector<1x1xf32>
    tpu.vector_store %arg9[%c0_28, %c0_29], %45 {strides = array<i32>} : memref<1x1xf32, #tpu.memory_space<vmem>>, vector<1x1xf32>,
    %c0_30 = arith.constant 0 : index
    %c0_31 = arith.constant 0 : index
    %47 = vector.load %arg6[%c0_30, %c0_31] : memref<1x1xf32, #tpu.memory_space<vmem>>, vector<1x1xf32>
    tpu.vector_store %arg6[%c0_30, %c0_31], %18 {strides = array<i32>} : memref<1x1xf32, #tpu.memory_space<vmem>>, vector<1x1xf32>,
    %c0_i32_32 = arith.constant 0 : i32
    %48 = arith.cmpi eq, %arg1, %c0_i32_32 : i32
    %49 = arith.extui %48 : i1 to i32
    %c0_i32_33 = arith.constant 0 : i32
    %50 = arith.cmpi ne, %49, %c0_i32_33 : i32
    scf.if %50 {
      %c0_34 = arith.constant 0 : index
      %c0_35 = arith.constant 0 : index
      %51 = vector.load %arg6[%c0_34, %c0_35] : memref<1x1xf32, #tpu.memory_space<vmem>>, vector<1x1xf32>
      %c0_36 = arith.constant 0 : index
      %c0_37 = arith.constant 0 : index
      %52 = vector.load %arg7[%c0_36, %c0_37] : memref<1x1xf32, #tpu.memory_space<vmem>>, vector<1x1xf32>
      %53 = math.log %52 : vector<1x1xf32>
      %54 = arith.addf %51, %53 : vector<1x1xf32>
      %c0_38 = arith.constant 0 : index
      %c0_39 = arith.constant 0 : index
      %55 = vector.load %arg8[%c0_38, %c0_39] : memref<1x1xf32, #tpu.memory_space<vmem>>, vector<1x1xf32>
      %c0_40 = arith.constant 0 : index
      %c0_41 = arith.constant 0 : index
      %56 = vector.load %arg9[%c0_40, %c0_41] : memref<1x1xf32, #tpu.memory_space<vmem>>, vector<1x1xf32>
      %57 = arith.mulf %56, %54 : vector<1x1xf32>
      %58 = arith.subf %55, %57 : vector<1x1xf32>
      %59 = vector.shape_cast %58 : vector<1x1xf32> to vector<1x1xf32>
      %60 = vector.broadcast %59 : vector<1x1xf32> to vector<8x128xf32>
      %c0_42 = arith.constant 0 : index
      %c0_43 = arith.constant 0 : index
      %c0_44 = arith.constant 0 : index
      %61 = vector.load %arg4[%c0_42, %c0_43, %c0_44] : memref<1x8x128xf32, #tpu.memory_space<vmem>>, vector<1x8x128xf32>
      %62 = vector.shape_cast %61 : vector<1x8x128xf32> to vector<8x128xf32>
      %63 = vector.shape_cast %60 : vector<8x128xf32> to vector<1x8x128xf32>
      tpu.vector_store %arg4[%c0_42, %c0_43, %c0_44], %63 {strides = array<i32>} : memref<1x8x128xf32, #tpu.memory_space<vmem>>, vector<1x8x128xf32>,
      %c0_45 = arith.constant 0 : index
      %c0_46 = arith.constant 0 : index
      %64 = vector.load %arg9[%c0_45, %c0_46] : memref<1x1xf32, #tpu.memory_space<vmem>>, vector<1x1xf32>
      %65 = vector.shape_cast %64 : vector<1x1xf32> to vector<1x1xf32>
      %66 = vector.broadcast %65 : vector<1x1xf32> to vector<8x128xf32>
      %c0_47 = arith.constant 0 : index
      %c0_48 = arith.constant 0 : index
      %c0_49 = arith.constant 0 : index
      %67 = vector.load %arg5[%c0_47, %c0_48, %c0_49] : memref<1x8x128xf32, #tpu.memory_space<vmem>>, vector<1x8x128xf32>
      %68 = vector.shape_cast %67 : vector<1x8x128xf32> to vector<8x128xf32>
      %69 = vector.shape_cast %66 : vector<8x128xf32> to vector<1x8x128xf32>
      tpu.vector_store %arg5[%c0_47, %c0_48, %c0_49], %69 {strides = array<i32>} : memref<1x8x128xf32, #tpu.memory_space<vmem>>, vector<1x8x128xf32>,
    } else {
    }
    return
  }
  func.func @transform_0(%arg0: i32, %arg1: i32) -> (i32, i32, i32) {
    %c0_i32 = arith.constant 0 : i32
    %c0_i32_0 = arith.constant 0 : i32
    return %arg0, %arg1, %c0_i32 : i32, i32, i32
  }
  func.func @transform_1(%arg0: i32, %arg1: i32) -> (i32, i32, i32) {
    %c0_i32 = arith.constant 0 : i32
    %c0_i32_0 = arith.constant 0 : i32
    return %arg0, %arg1, %c0_i32 : i32, i32, i32
  }
  func.func @transform_2(%arg0: i32, %arg1: i32) -> (i32, i32, i32) {
    %c0_i32 = arith.constant 0 : i32
    %c0_i32_0 = arith.constant 0 : i32
    %c0_i32_1 = arith.constant 0 : i32
    return %arg0, %c0_i32, %c0_i32_0 : i32, i32, i32
  }
  func.func @transform_3(%arg0: i32, %arg1: i32) -> (i32, i32, i32) {
    %c0_i32 = arith.constant 0 : i32
    %c0_i32_0 = arith.constant 0 : i32
    %c0_i32_1 = arith.constant 0 : i32
    return %arg0, %c0_i32, %c0_i32_0 : i32, i32, i32
  }
}

</mosaic_0001>

<bundles_post_ra>
// kernel: tpu_custom_call.1
= control target key start
LH: loop header
LB: loop body
LE: loop exit
PB: predicated region body
PF: predicated region fallthrough
CT: control target
= control target key end

     0   :  { %9 = vsyncpa [#allocation7], 0  ;;  %s1114_s0 = inlined_call_operand.hbm [shape: f32[2,8,128], index: 0, kind: input, shape index: {}]   ;;  %s1115_s1 = inlined_call_operand.hbm [shape: f32[2,8,128], index: 1, kind: input, shape index: {}]   ;;  %s1116_s2 = inlined_call_operand.hbm [shape: f32[2,8,128], index: 2, kind: output, shape index: {0}]   ;;  %s1117_s3 = inlined_call_operand.hbm [shape: f32[2,8,128], index: 3, kind: output, shape index: {1}]  }
   0x1   :  { %11 = vsyncpa [#allocation7 + $0x1], 0 }
   0x2   :  { %12 = vsyncpa [#allocation10], 0 }
   0x3   :  { %14 = vsyncpa [#allocation10 + $0x1], 0 }
   0x4   :  { %15 = vsyncpa [#allocation8], 0 }
   0x5   :  { %17 = vsyncpa [#allocation8 + $0x1], 0 }
   0x6   :  { %18 = vsyncpa [#allocation13], 0 }
   0x7   :  { %20 = vsyncpa [#allocation13 + $0x1], 0  ;;  %s838_s12 = smov 0   ;;  %s840_s13 = smov 0  }
   0x8   :  { %s842_s14 = smov 0   ;;  %s844_s15 = smov 0  }
   0x9   :  { %s846_s16 = smov 0   ;;  %s848_s17 = smov 0  }
   0xa LB: > { %s528_s18 = sadd.s32 4294967295, %s809_s17   ;;  %s529_s19 = sadd.s32 4294967294, %s809_s17   ;;  %s809_s17 = sphi %s848_s17, %s26_s17   ;;  %s805_s16 = sphi %s846_s16, %s1137_s16   ;;  %s801_s15 = sphi %s844_s15, %s1136_s15   ;;  %s797_s14 = sphi %s842_s14, %s1135_s14   ;;  %s793_s13 = sphi %s840_s13, %s1134_s13   ;;  %s789_s12 = sphi %s838_s12, %s1133_s12  }
   0xb   : > { %s38_s20 = sadd.s32 1, %s805_s16  ;;  %s47_s21 = sadd.s32 1, %s797_s14 }
   0xc   : > { %p40_p0 = scmp.ge.s32.totalorder %s38_s20, 2  ;;  %p54_p1 = scmp.ne.s32.totalorder %s797_s14, %s793_s13 }
   0xd   : > { %p55_p2 = scmp.eq.s32.totalorder %s809_s17, 0  ;;  %p60_p3 = scmp.ne.s32.totalorder %s793_s13, %s789_s12 }
   0xe   : > { %s1139_s20 = smov (%p40_p0, %s38_s20), 0  ;;  %p61_p5 = scmp.eq.s32.totalorder %s528_s18, 0 }
   0xf   : > { %p879_p4 = por %p55_p2, %p54_p1  ;;  %s42_s23 = ssub.s32 %s805_s16, %s1139_s20 }
  0x10   : > { %p112_p6 = scmp.eq.s32.totalorder %s528_s18, 1  ;;  %p45_p7 = scmp.eq.s32.totalorder %s42_s23, 0 }
  0x11   : > { %p885_p8 = por %p61_p5, %p60_p3  ;;  %p118_p10 = scmp.eq.s32.totalorder %s529_s19, 1 }
  0x12   : > { %p889_p9 = por %p112_p6, %p54_p1  ;;  %p570_p13 = scmp.lt.s32.totalorder %s809_s17, 2 }
  0x13   : > { %s1121_s24 = scalar_select %p885_p8, 1, 0 }
  0x14   : > { %s1122_s25 = scalar_select %p889_p9, 1, 0 }
  0x15   : > { %s894_s26 = scalar_select %p45_p7, %s797_s14, %s47_s21  }
  0x16   : > { %p896_p11 = por %p118_p10, %p60_p3  ;;  %s903_s28 = sand.u32 1, %s797_s14  }
  0x17   : > { %s532_s29 = sshll.u32 %s903_s28, 3  ;;  %s533_s30 = sshll.u32 %s805_s16, 7 }
  0x18   : > { %s1123_s27 = scalar_select %p896_p11, 1, 0 }
  0x19   : > { %s912_s6 = scalar_lea.hbm %s1114_s0, %s533_s30  ;;  %s168_s7 = scalar_lea.vmem [#allocation6], %s532_s29 }
  0x1a   : > { %s176_s8 = sshll.u32 %s168_s7, 4  ;;  %p920_p0 = pnand %p570_p13, %p879_p4  ;;  %s916_s8 = int_to_ptr.vmem [resolvable:$true] %s176_s8 }
  0x1b   : > { %s165_s10 = scalar_lea.sflag [#allocation7], %s903_s28  ;;  %s631_s11 = scalar_lea.hbm %s912_s6, 128 }
  0x1c   : > { %p632_p3 = scmp.ne.s32.totalorder %s912_s6, %s631_s11  ;;  %p633_p5 = pneg %p920_p0 }
  0x1d   : > { %s636_s21 = scalar_lea.hbm %s1114_s0, 256  ;;  %p637_p4 = scmp.lt.u32.totalorder %s912_s6, %s1114_s0 }
  0x1e   : > { %p634_p6 = pnand %p633_p5, %p632_p3  ;;  %p638_p10 = scmp.lt.u32.totalorder %s636_s21, %s631_s11 }
  0x1f   : > { %p640_p12 = scmp.lt.u32.totalorder %s631_s11, %s912_s6 }
  0x20   : > { %p635_p7 = pneg %p634_p6  ;;  %p639_p13 = por %p638_p10, %p637_p4 }
  0x22   : > { %p641_p1 = por %p640_p12, %p639_p13 }
  0x24   : > { %p642_p2 = pnand %p641_p1, %p635_p7 }
  0x26   : > { %645 = shalt.err (!%p642_p2)
}
  0x27   : > { %s646_s4 = scalar_lea.vmem %s916_s8, 128  ;;  %s811_s5 = smov [#allocation6]  }
  0x28   : > { %p647_p3 = scmp.ne.s32.totalorder %s916_s8, %s646_s4  ;;  %s651_s7 = sshll.u32 %s811_s5, 4  ;;  %s652_s7 = int_to_ptr.vmem [resolvable:$false] %s651_s7 }
  0x29   : > { %s653_s18 = scalar_lea.vmem %s652_s7, 256  ;;  %p654_p9 = scmp.lt.s32.totalorder %s916_s8, %s652_s7 }
  0x2a   : > { %p649_p6 = pnand %p647_p3, %p633_p5  ;;  %p655_p4 = scmp.lt.s32.totalorder %s653_s18, %s646_s4 }
  0x2c   : > { %p650_p11 = pneg %p649_p6  ;;  %p656_p10 = por %p655_p4, %p654_p9 }
  0x2e   : > { %p657_p12 = pnand %p656_p10, %p650_p11 }
  0x30   : > { %660 = shalt.err (!%p657_p12)
}
  0x31   : > { %559 = dma.hbm_to_vmem [thread:$0]  (!%p920_p0), %s912_s6, 128, %s916_s8, %s165_s10  }
  0x32   : > { %p1125_p1 = scmp.lt.s32.totalorder %s809_s17, 3  ;;  %p1126_p2 = scmp.ge.s32.totalorder %s809_s17, 1 }
  0x33   : > { %s965_s22 = scalar_lea.hbm %s1115_s1, %s533_s30  ;;  %s187_s23 = scalar_lea.vmem [#allocation9], %s532_s29 }
  0x34   : > { %p956_p7 = pnand %p1126_p2, %p1125_p1  ;;  %s195_s4 = sshll.u32 %s187_s23, 4  ;;  %s196_s4 = int_to_ptr.vmem [resolvable:$true] %s195_s4 }
  0x35   : > { %s184_s6 = scalar_lea.sflag [#allocation10], %s903_s28  ;;  %s661_s8 = scalar_lea.hbm %s965_s22, 128 }
  0x36   : > { %s1127_s11 = scalar_select %p956_p7, 1, 0 }
  0x37   : > { %p662_p9 = scmp.ne.s32.totalorder %s965_s22, %s661_s8  ;;  %s666_s30 = scalar_lea.hbm %s1115_s1, 256 }
  0x38   : > { %p667_p3 = scmp.lt.u32.totalorder %s965_s22, %s1115_s1  ;;  %p668_p6 = scmp.lt.u32.totalorder %s666_s30, %s661_s8 }
  0x39   : > { %p664_p11 = pnand %p662_p9, %p633_p5  ;;  %p670_p10 = scmp.lt.u32.totalorder %s661_s8, %s965_s22 }
  0x3a   : > { %p669_p4 = por %p668_p6, %p667_p3 }
  0x3b   : > { %p665_p13 = pneg %p664_p11 }
  0x3c   : > { %p671_p12 = por %p670_p10, %p669_p4 }
  0x3e   : > { %p672_p1 = pnand %p671_p12, %p665_p13 }
  0x40   : > { %675 = shalt.err (!%p672_p1)
}
  0x41   : > { %s676_s28 = scalar_lea.vmem %s196_s4, 128  ;;  %s812_s29 = smov [#allocation9]  }
  0x42   : > { %p677_p2 = scmp.ne.s32.totalorder %s196_s4, %s676_s28  ;;  %s681_s19 = sshll.u32 %s812_s29, 4  ;;  %s682_s19 = int_to_ptr.vmem [resolvable:$false] %s681_s19 }
  0x43   : > { %s683_s21 = scalar_lea.vmem %s682_s19, 256  ;;  %p684_p8 = scmp.lt.s32.totalorder %s196_s4, %s682_s19 }
  0x44   : > { %p679_p9 = pnand %p677_p2, %p633_p5  ;;  %p685_p7 = scmp.lt.s32.totalorder %s683_s21, %s676_s28 }
  0x46   : > { %p680_p11 = pneg %p679_p9  ;;  %p686_p3 = por %p685_p7, %p684_p8 }
  0x48   : > { %p687_p6 = pnand %p686_p3, %p680_p11 }
  0x4a   : > { %690 = shalt.err (!%p687_p6)
}
  0x4b   : > { %562 = dma.hbm_to_vmem [thread:$0]  (!%p920_p0), %s965_s22, 128, %s196_s4, %s184_s6  }
  0x4c   : > { %p1128_p13 = scmp.ne.s32.totalorder %s1127_s11, 0 }
  0x4d   : > { %s992_s23 = sand.u32 (!%p1128_p13), 1, %s793_s13   ;;  %p1129_p8 = scmp.ne.s32.totalorder (!%p1128_p13), %s1121_s24, 0 }
  0x4e   : > { %204 = sbr.rel (%p1128_p13) target bundleno = 742 (0x2e6), region = 28  ;;  %s995_s8 = sshll.u32 (!%p1128_p13), %s992_s23, 3 }
  0x4f   : > { %s207_s10 = scalar_lea.sflag (!%p1128_p13), [#allocation7], %s992_s23  ;;  %s210_s5 = scalar_lea.vmem (!%p1128_p13), [#allocation6], %s995_s8 }
  0x55   : > { %772 = dma.done.wait (%p1129_p8), %s207_s10, 128  }
  0x56   : > { %774 = vsyncadd (%p1129_p8), %s207_s10, 4294967168  ;;  %s216_s9 = scalar_lea.sflag [#allocation10], %s992_s23  ;;  %s219_s11 = scalar_lea.vmem [#allocation9], %s995_s8 }
  0x57   : > { %776 = dma.done.wait (%p1129_p8), %s216_s9, 128  }
  0x58   : > { %778 = vsyncadd (%p1129_p8), %s216_s9, 4294967168  ;;  %vm256_vm0 = vcmask 0   ;;  %v813_v0 = vmov -inf   ;;  %v261_v1 = vld [vmem:[%s210_s5] sm:$0xff]  ;;  %v814_v3 = vmov 0   ;;  %v815_v4 = vmov 0.0  }
  0x59   : > { %257 = vst.msk [vmem:[#allocation2] sm:$0x1] %vm256_vm0, %v813_v0  ;;  %v262_v2 = vmul.f32 10.0, %v261_v1  ;;  %623 = vset.pattern.permute.xlu0 %v814_v3  ;;  %624 = vset.pattern.permute.xlu1 %v814_v3  ;;  %258 = vst.msk [vmem:[#allocation3] sm:$0x1] %vm256_vm0, %v815_v4  ;;  %v282_v8 = vlaneseq  ;;  %v263_v22 = vld [vmem:[%s219_s11] sm:$0xff] }
  0x5a   : > { %259 = vst.msk [vmem:[#allocation4] sm:$0x1] %vm256_vm0, %v815_v4  ;;  %260 = vst.msk [vmem:[#allocation5] sm:$0x1] %vm256_vm0, %v815_v4  ;;  %vm264_vm1 = vcmp.ge.f32.partialorder %v263_v22, 0.01 }
  0x5b   : > { %267 = vmax.xlane.f32.xlu0 %v262_v2  ;;  %v1013_v11 = vshrl.u32 %v282_v8, 7  ;;  %v265_v24 = vsel %vm264_vm1, %v263_v22, 0.0  ;;  %s244_s24 = scalar_lea.vmem [#allocation11], %s995_s8  ;;  %s544_s4 = sshll.u32 %s801_s15, 7 }
  0x5c   : > { %v305_v25 = vmul.f32 %v265_v24, %v262_v2  ;;  %s380_s22 = sshll.u32 %s244_s24, 4  ;;  %s251_s6 = scalar_lea.vmem [#allocation12], %s995_s8  ;;  %s1024_s22 = int_to_ptr.vmem [resolvable:$true] %s380_s22 }
  0x5d   : > { %v284_v15 = vsub.s32 0, %v1013_v11  ;;  %s393_s30 = sshll.u32 %s251_s6, 4  ;;  %s1034_s28 = scalar_lea.hbm %s1116_s2, %s544_s4  ;;  %s1036_s30 = int_to_ptr.vmem [resolvable:$true] %s393_s30 }
  0x5e   : > { %s362_s29 = scalar_lea.sflag [#allocation8], %s992_s23  ;;  %s691_s19 = scalar_lea.vmem %s1024_s22, 128 }
  0x5f   : > { %p692_p0 = scmp.ne.s32.totalorder %s1024_s22, %s691_s19  ;;  %p1130_p5 = scmp.ne.s32.totalorder %s1122_s25, 0 }
  0x60   : > { %v266_v13 = vld [vmem:[#allocation2] sm:$0x1]  ;;  %v279_v36 = vld [vmem:[#allocation3] sm:$0x1]  ;;  %s816_s21 = smov [#allocation11]  }
  0x61   : > { %v316_v48 = vld [vmem:[#allocation5] sm:$0x1]  ;;  %v304_v53 = vld [vmem:[#allocation4] sm:$0x1]  ;;  %p693_p7 = pnand %p692_p0, %p1130_p5  ;;  %s695_s10 = sshll.u32 %s816_s21, 4  ;;  %s696_s10 = int_to_ptr.vmem [resolvable:$false] %s695_s10 }
  0x62   : > { %s697_s5 = scalar_lea.vmem %s696_s10, 256  ;;  %p698_p10 = scmp.lt.s32.totalorder %s1024_s22, %s696_s10 }
  0x63   : > { %p694_p4 = pneg %p693_p7  ;;  %p699_p12 = scmp.lt.s32.totalorder %s697_s5, %s691_s19 }
  0x65   : > { %p700_p1 = por %p699_p12, %p698_p10 }
  0x67   : > { %p701_p2 = pnand %p700_p1, %p694_p4 }
  0xe8   : > { %v268_v5 = vpop.xlane.xlu0 %267 }
  0xe9   : > { %v269_v6 = vrot.slane %v268_v5, 4 }
  0xeb   : > { %v270_v7 = vmax.f32 %v268_v5, %v269_v6 }
  0xed   : > { %v271_v9 = vrot.slane %v270_v7, 2 }
  0xef   : > { %v272_v10 = vmax.f32 %v270_v7, %v271_v9 }
  0xf1   : > { %v273_v12 = vrot.slane %v272_v10, 1 }
  0xf3   : > { %v274_v14 = vmax.f32 %v272_v10, %v273_v12 }
  0xf5   : > { %v275_v16 = vmax.f32 %v266_v13, %v274_v14 }
  0xf7   : > { %v276_v17 = vsub.f32 %v266_v13, %v275_v16  ;;  %327 = vst.msk [vmem:[#allocation2] sm:$0x1] %vm256_vm0, %v275_v16  ;;  %v285_v18 = vrot.slane %v275_v16, %v284_v15 }
  0xf9   : > { %287 = vperm.xlu0 %623, %v285_v18   ;;  %v277_v26 = vmul.f32 1.442695, %v276_v17 }
  0xfe   : > { %v331_v59 = vld [vmem:[#allocation2] sm:$0x1] }
 0x178   : > { %v288_v19 = vpop.permute.xlu0 %287 }
 0x179   : > { %v290_v20 = vsub.f32 %v262_v2, %v288_v19 }
 0x17b   : > { %v291_v21 = vmul.f32 1.442695, %v290_v20 }
 0x17d   : > { %625 = vpow2.f32 %v291_v21 }
 0x17e   : > { %627 = vpow2.f32 %v277_v26 }
 0x187   : > { %v626_v23 = vpop.eup %625 }
 0x188   : > { %293 = vadd.xlane.f32.xlu1 %v626_v23  ;;  %v628_v35 = vpop.eup %627 }
 0x189   : > { %v280_v41 = vmul.f32 %v628_v35, %v279_v36 }
 0x18c   : > { %317 = vadd.xlane.f32.xlu1 %v265_v24 }
 0x190   : > { %306 = vadd.xlane.f32.xlu1 %v305_v25 }
 0x215   : > { %v294_v27 = vpop.xlane.xlu1 %293 }
 0x216   : > { %v295_v28 = vrot.slane %v294_v27, 4 }
 0x218   : > { %v296_v29 = vadd.f32 %v295_v28, %v294_v27 }
 0x219   : > { %v318_v30 = vpop.xlane.xlu1 %317 }
 0x21a   : > { %v297_v31 = vrot.slane %v296_v29, 2  ;;  %v319_v32 = vrot.slane %v318_v30, 4 }
 0x21c   : > { %v298_v33 = vadd.f32 %v297_v31, %v296_v29  ;;  %v320_v34 = vadd.f32 %v319_v32, %v318_v30 }
 0x21d   : > { %v307_v37 = vpop.xlane.xlu1 %306 }
 0x21e   : > { %v299_v38 = vrot.slane %v298_v33, 1  ;;  %v321_v39 = vrot.slane %v320_v34, 2  ;;  %v308_v40 = vrot.slane %v307_v37, 4 }
 0x220   : > { %v300_v42 = vadd.f32 %v299_v38, %v298_v33  ;;  %v322_v43 = vadd.f32 %v321_v39, %v320_v34  ;;  %v309_v44 = vadd.f32 %v308_v40, %v307_v37 }
 0x222   : > { %v301_v45 = vadd.f32 %v300_v42, %v280_v41  ;;  %v323_v46 = vrot.slane %v322_v43, 1  ;;  %v310_v47 = vrot.slane %v309_v44, 2 }
 0x224   : > { %303 = vst.msk [vmem:[#allocation3] sm:$0x1] %vm256_vm0, %v301_v45  ;;  %v324_v49 = vadd.f32 %v323_v46, %v322_v43  ;;  %v311_v50 = vadd.f32 %v310_v47, %v309_v44 }
 0x226   : > { %v325_v51 = vadd.f32 %v324_v49, %v316_v48  ;;  %v312_v52 = vrot.slane %v311_v50, 1 }
 0x228   : > { %326 = vst.msk [vmem:[#allocation5] sm:$0x1] %vm256_vm0, %v325_v51  ;;  %v313_v54 = vadd.f32 %v312_v52, %v311_v50 }
 0x22a   : > { %v314_v55 = vadd.f32 %v313_v54, %v304_v53 }
 0x22b   : > { %v332_v56 = vld [vmem:[#allocation3] sm:$0x1] }
 0x22c   : > { %315 = vst.msk [vmem:[#allocation4] sm:$0x1] %vm256_vm0, %v314_v55  ;;  %629 = vlog2.f32 %v332_v56 }
 0x22f   : > { %v337_v61 = vld [vmem:[#allocation5] sm:$0x1] }
 0x230   : > { %v541_v2 = vld [vmem:[#allocation5] ss:$0 sm:$0xff] }
 0x233   : > { %v336_v63 = vld [vmem:[#allocation4] sm:$0x1] }
 0x236   : > { %v630_v57 = vpop.eup %629 }
 0x237   : > { %v334_v58 = vmul.f32 0.6931472, %v630_v57 }
 0x239   : > { %v335_v60 = vadd.f32 %v334_v58, %v331_v59 }
 0x23b   : > { %v338_v62 = vmul.f32 %v337_v61, %v335_v60 }
 0x23d   : > { %v339_v0 = vsub.f32 %v336_v63, %v338_v62 }
 0x23f   : > { %v344_v1 = vrot.slane %v339_v0, %v284_v15 }
 0x241   : > { %346 = vperm.xlu1 %624, %v344_v1  }
 0x245   : > { %357 = vperm.xlu1 %624, %v541_v2  }
 0x2c0   : > { %v347_v3 = vpop.permute.xlu1 %346 }
 0x2c1   : > { %349 = vst [vmem:[%s244_s24] sm:$0xff] %v347_v3 }
 0x2c2   : > { %704 = shalt.err (!%p701_p2)
}
 0x2c3   : > { %s705_s9 = scalar_lea.hbm %s1034_s28, 128  ;;  %s709_s7 = scalar_lea.hbm %s1116_s2, 256 }
 0x2c4   : > { %p706_p9 = scmp.ne.s32.totalorder %s1034_s28, %s705_s9  ;;  %p710_p6 = scmp.lt.u32.totalorder %s1034_s28, %s1116_s2 }
 0x2c5   : > { %p711_p13 = scmp.lt.u32.totalorder %s709_s7, %s705_s9  ;;  %p713_p0 = scmp.lt.u32.totalorder %s705_s9, %s1034_s28 }
 0x2c6   : > { %p707_p11 = pnand %p706_p9, %p1130_p5 }
 0x2c7   : > { %p712_p8 = por %p711_p13, %p710_p6 }
 0x2c8   : > { %p708_p3 = pneg %p707_p11 }
 0x2c9   : > { %p714_p7 = por %p713_p0, %p712_p8 }
 0x2cb   : > { %p715_p4 = pnand %p714_p7, %p708_p3 }
 0x2cd   : > { %718 = shalt.err (!%p715_p4)
}
 0x2ce   : > { %552 = dma.vmem_to_hbm [thread:$0]  (%p1130_p5), %s1024_s22, 128, %s1034_s28, %s362_s29   ;;  %v358_v4 = vpop.permute.xlu1 %357 }
 0x2cf   : > { %s1065_s5 = scalar_lea.hbm %s1117_s3, %s544_s4  ;;  %360 = vst [vmem:[%s251_s6] sm:$0xff] %v358_v4  ;;  %s367_s9 = scalar_lea.sflag [#allocation13], %s992_s23 }
 0x2d0   : > { %s719_s11 = scalar_lea.vmem %s1036_s30, 128  ;;  %s817_s24 = smov [#allocation12]  }
 0x2d1   : > { %p720_p10 = scmp.ne.s32.totalorder %s1036_s30, %s719_s11  ;;  %s723_s7 = sshll.u32 %s817_s24, 4  ;;  %s724_s7 = int_to_ptr.vmem [resolvable:$false] %s723_s7 }
 0x2d2   : > { %s725_s18 = scalar_lea.vmem %s724_s7, 256  ;;  %p726_p2 = scmp.lt.s32.totalorder %s1036_s30, %s724_s7 }
 0x2d3   : > { %p721_p12 = pnand %p720_p10, %p1130_p5  ;;  %p727_p9 = scmp.lt.s32.totalorder %s725_s18, %s719_s11 }
 0x2d5   : > { %p722_p1 = pneg %p721_p12  ;;  %p728_p11 = por %p727_p9, %p726_p2 }
 0x2d7   : > { %p729_p3 = pnand %p728_p11, %p722_p1 }
 0x2d9   : > { %732 = shalt.err (!%p729_p3)
}
 0x2da   : > { %s733_s15 = scalar_lea.hbm %s1065_s5, 128  ;;  %s737_s22 = scalar_lea.hbm %s1117_s3, 256 }
 0x2db   : > { %p734_p6 = scmp.ne.s32.totalorder %s1065_s5, %s733_s15  ;;  %p738_p0 = scmp.lt.u32.totalorder %s1065_s5, %s1117_s3 }
 0x2dc   : > { %p739_p7 = scmp.lt.u32.totalorder %s737_s22, %s733_s15  ;;  %p741_p10 = scmp.lt.u32.totalorder %s733_s15, %s1065_s5 }
 0x2dd   : > { %p735_p13 = pnand %p734_p6, %p1130_p5 }
 0x2de   : > { %p740_p4 = por %p739_p7, %p738_p0 }
 0x2df   : > { %p736_p8 = pneg %p735_p13 }
 0x2e0   : > { %p742_p12 = por %p741_p10, %p740_p4 }
 0x2e2   : > { %p743_p1 = pnand %p742_p12, %p736_p8 }
 0x2e4   : > { %746 = shalt.err (!%p743_p1)
}
 0x2e5   : > { %553 = dma.vmem_to_hbm [thread:$0]  (%p1130_p5), %s1036_s30, 128, %s1065_s5, %s367_s9  }
 0x2e6 PF: > { %s405_s28 = sand.u32 1, %s789_s12   ;;  %p1131_p2 = scmp.ne.s32.totalorder %s1123_s27, 0 }
 0x2e7   : > { %p1132_p9 = scmp.ge.s32.totalorder %s809_s17, 2  ;;  %s406_s29 = scalar_lea.sflag [#allocation8], %s405_s28 }
 0x2e9   : > { %p564_p11 = pnand %p1132_p9, %p1131_p2 }
 0x2eb   : > { %780 = dma.done.wait (!%p564_p11), %s406_s29, 128  }
 0x2ec   : > { %782 = vsyncadd (!%p564_p11), %s406_s29, 4294967168  ;;  %s415_s21 = scalar_lea.sflag [#allocation13], %s405_s28 }
 0x2ed   : > { %784 = dma.done.wait (!%p564_p11), %s415_s21, 128  }
 0x2ee   : > { %786 = vsyncadd (!%p564_p11), %s415_s21, 4294967168  ;;  %s26_s17 = sadd.s32 1, %s809_s17   ;;  %s1133_s12 = smov %s793_s13 }
 0x2ef   : > { %p23_p3 = scmp.ge.s32.totalorder %s26_s17, 4   ;;  %s1134_s13 = smov %s797_s14 }
 0x2f0   : > { %s1135_s14 = smov %s894_s26  ;;  %s1136_s15 = smov %s805_s16 }
 0x2f1   : > { %s1137_s16 = smov %s1139_s20  ;;  %25 = sbr.rel (!%p23_p3) target bundleno = 10 (0xa), region = 111 }
 0x2f8   :  { %420 = vsyncpa [#allocation7], 1 }
 0x2f9   :  { %422 = vsyncpa [#allocation7 + $0x1], 1 }
 0x2fa   :  { %423 = vsyncpa [#allocation10], 1 }
 0x2fb   :  { %425 = vsyncpa [#allocation10 + $0x1], 1 }
 0x2fc   :  { %426 = vsyncpa [#allocation8], 1 }
 0x2fd   :  { %428 = vsyncpa [#allocation8 + $0x1], 1 }
 0x2fe   :  { %429 = vsyncpa [#allocation13], 1 }
 0x2ff   :  { %431 = vsyncpa [#allocation13 + $0x1], 1 }

</bundles_post_ra>
